<compile_context>
chip_gen: v6e
topology: v6e:2x2x1
jax: 0.10.0
libtpu: 0.0.40
codegen_flags: <defaults>
</compile_context>

<pallas_src>
import functools

import numpy as np

import jax
import jax.numpy as jnp
from jax.experimental import pallas as pl
from jax.experimental.pallas import tpu as pltpu


_LANE = 128
_MAX_TILE_E = 128 * 1024  # 128K lanes/tile: ~512 KiB f32 in + 128 KiB i8 out per buffer
                          # (double-buffered ~1.3 MiB -> safe on v5e/v6e/v7x VMEM)


def _round_up(x, m):
    return (x + m - 1) // m * m


def _dropedge_mask_kernel(rnd_ref, mask_ref, *, p):
    """rnd_ref: (1, TILE_E) f32 uniform [0,1); mask_ref: (1, TILE_E) int8 keep mask."""
    mask_ref[...] = (rnd_ref[...] > jnp.float32(p)).astype(jnp.int8)


def _dropedge_mask(rnd_pad, p, tile_e):
    e_pad = rnd_pad.shape[1]
    grid = (e_pad // tile_e,)
    kernel = functools.partial(_dropedge_mask_kernel, p=float(p))
    return pl.pallas_call(
        kernel,
        grid=grid,
        in_specs=[pl.BlockSpec((1, tile_e), lambda i: (0, i))],
        out_specs=pl.BlockSpec((1, tile_e), lambda i: (0, i)),
        out_shape=jax.ShapeDtypeStruct((1, e_pad), jnp.int8),
        compiler_params=pltpu.CompilerParams(
            dimension_semantics=("parallel",)),
    )(rnd_pad)


def drop_edge(ei, p=0.5, training=True, key=None):
    """Pallas-backed DropEdge forward. `ei` is (2, E) int32 (PyTorch edge_index layout)."""
    if not training:
        return ei
    if key is None:
        key = jax.random.PRNGKey(0)

    E = ei.shape[1]
    tile_e = min(_round_up(max(E, 1), _LANE), _MAX_TILE_E)
    e_pad = _round_up(max(E, 1), tile_e)

    # Per-edge uniforms (padded region is trimmed before use). jax.random is
    # used instead of pltpu.prng_* so the kernel also runs under interpret mode.
    rnd = jax.random.uniform(key, (1, e_pad), dtype=jnp.float32)

    mask = _dropedge_mask(rnd, p, tile_e)

    # Compaction to the dynamic PyTorch shape ei[:, rnd > p].
    # TODO(synk): dynamic output shapes are not expressible inside jit/Pallas;
    # downstream code that tolerates a fixed-size padded output + count could
    # keep this on-device (cumsum + gather) and avoid the host sync.
    keep = np.asarray(mask[0, :E]).astype(bool)
    return jnp.asarray(np.asarray(ei)[:, keep])


if __name__ == "__main__":
    key = jax.random.PRNGKey(0)
    k_ei, k_drop = jax.random.split(key)

    num_nodes = 32
    E = 256
    ei = jax.random.randint(k_ei, (2, E), 0, num_nodes, dtype=jnp.int32)

    # Training mode: edges randomly dropped with p=0.5.
    out_train = drop_edge(ei, p=0.5, training=True, key=k_drop)
    jax.block_until_ready(out_train)
    assert out_train.shape[0] == 2 and 0 <= out_train.shape[1] <= E

    # Every kept column must be one of the original columns (order-preserving subset).
    orig_pairs = set(map(tuple, np.asarray(ei).T.tolist()))
    assert all(tuple(c) in orig_pairs for c in np.asarray(out_train).T.tolist())

    # Eval mode: identity.
    out_eval = drop_edge(ei, p=0.5, training=False)
    jax.block_until_ready(out_eval)
    assert bool(jnp.array_equal(out_eval, ei))

    print("KERNEL_OK")
</pallas_src>

<mosaic_0001>
module attributes {stable_mosaic.version = 11 : i64} {
  func.func @_dropedge_mask_kernel(%arg0: i32, %arg1: memref<1x256xf32, #tpu.memory_space<vmem>>, %arg2: memref<1x256xi8, #tpu.memory_space<vmem>>) attributes {dimension_semantics = [#tpu.dimension_semantics<parallel>], iteration_bounds = array<i64: 1>, scalar_prefetch = 0 : i64, scratch_operands = 0 : i64, tpu.core_type = #tpu.core_type<tc>, window_params = [{transform_indices = @transform_0, window_bounds = array<i64: 1, 256>}, {transform_indices = @transform_1, window_bounds = array<i64: 1, 256>}]} {
    %c0 = arith.constant 0 : index
    %c0_0 = arith.constant 0 : index
    %0 = vector.load %arg1[%c0, %c0_0] : memref<1x256xf32, #tpu.memory_space<vmem>>, vector<1x256xf32>
    %cst = arith.constant 5.000000e-01 : f32
    %1 = vector.broadcast %cst : f32 to vector<1x256xf32>
    %2 = arith.cmpf ogt, %0, %1 : vector<1x256xf32>
    %3 = arith.extui %2 : vector<1x256xi1> to vector<1x256xi8>
    %c0_1 = arith.constant 0 : index
    %c0_2 = arith.constant 0 : index
    %4 = vector.load %arg2[%c0_1, %c0_2] : memref<1x256xi8, #tpu.memory_space<vmem>>, vector<1x256xi8>
    tpu.vector_store %arg2[%c0_1, %c0_2], %3 {strides = array<i32>} : memref<1x256xi8, #tpu.memory_space<vmem>>, vector<1x256xi8>,
    return
  }
  func.func @transform_0(%arg0: i32) -> (i32, i32) {
    %c0_i32 = arith.constant 0 : i32
    %c0_i32_0 = arith.constant 0 : i32
    return %c0_i32, %arg0 : i32, i32
  }
  func.func @transform_1(%arg0: i32) -> (i32, i32) {
    %c0_i32 = arith.constant 0 : i32
    %c0_i32_0 = arith.constant 0 : i32
    return %c0_i32, %arg0 : i32, i32
  }
}

</mosaic_0001>

<bundles_post_ra>
// kernel: tpu_custom_call.1
= control target key start
LH: loop header
LB: loop body
LE: loop exit
PB: predicated region body
PF: predicated region fallthrough
CT: control target
= control target key end

     0   :  { %6 = vsyncpa [#allocation3], 0  ;;  %s175_s0 = inlined_call_operand.hbm [shape: f32[1,256], index: 0, kind: input, shape index: {}]   ;;  %s176_s1 = inlined_call_operand.hbm [shape: s8[1,256], index: 1, kind: output, shape index: {}]  }
   0x1   :  { %7 = vsyncpa [#allocation4], 0  ;;  %s154_s6 = smov [#allocation2]  }
   0x2   :  { %s14_s7 = sshll.u32 %s154_s6, 4  ;;  %s15_s7 = int_to_ptr.vmem [resolvable:$true] %s14_s7 }
   0x3   :  { %s118_s8 = scalar_lea.vmem %s15_s7, 32  ;;  %p123_p1 = scmp.lt.s32.totalorder %s15_s7, %s15_s7 }
   0x4   :  { %p119_p0 = scmp.ne.s32.totalorder %s15_s7, %s118_s8  ;;  %p124_p2 = scmp.lt.s32.totalorder %s118_s8, %s118_s8 }
   0x6   :  { %p125_p3 = por %p124_p2, %p123_p1 }
   0x8   :  { %p126_p4 = pnand %p125_p3, %p119_p0 }
   0xa   :  { %129 = shalt.err (!%p126_p4)
}
   0xb   :  { %17 = dma.hbm_to_vmem [thread:$0]  %s175_s0, 32, %s15_s7, [#allocation3]  }
   0xc   :  { %150 = dma.done.wait [#allocation3], 32  }
   0xd   :  { %151 = vsyncadd [#allocation3], 4294967264  ;;  %v29_v0 = vlaneseq  ;;  %v155_v1 = vmov 286326784   ;;  %v23_v6 = vld [vmem:[#allocation2] sm:$0x3]  ;;  %v157_v9 = vmov 0  }
   0xe   :  { %v27_v2 = vunpack.c.l.s4 %v155_v1  ;;  %vm24_vm0 = vcmp.gt.f32.partialorder %v23_v6, 0.5  ;;  %v156_v7 = vmov 1966171168   ;;  %vm80_vm4 = vcmask 1040384   ;;  %s158_s0 = smov [#allocation5]  }
   0xf   :  { %v30_v3 = vshrl.u32 %v29_v0, 7  ;;  %v40_v8 = vunpack.c.l.s4 %v156_v7  ;;  %v25_v10 = vsel %vm24_vm0, 1, %v157_v9  ;;  %vm81_vm5 = vsmask.f32 0  ;;  %s96_s11 = sshll.u32 %s158_s0, 4  ;;  %s97_s11 = int_to_ptr.vmem [resolvable:$true] %s96_s11 }
  0x10   :  { %v28_v4 = vunpack.c.0.s8 %v27_v2  ;;  %vm83_vm6 = vcmask 1041409   ;;  %vm84_vm7 = vsmask.f32 1024  ;;  %vm82_vm9 = vmand %vm80_vm4, %vm81_vm5  ;;  %v87_v26 = vld [vmem:[#allocation5] sm:$0x3]  ;;  %s130_s12 = scalar_lea.vmem %s97_s11, 32  ;;  %p135_p6 = scmp.lt.s32.totalorder %s97_s11, %s97_s11 }
  0x11   :  { %v41_v12 = vunpack.c.0.s8 %v40_v8  ;;  %vm85_vm10 = vmand %vm83_vm6, %vm84_vm7  ;;  %p131_p5 = scmp.ne.s32.totalorder %s97_s11, %s130_s12  ;;  %p136_p7 = scmp.lt.s32.totalorder %s130_s12, %s130_s12 }
  0x12   :  { %v31_v5 = vsub.s32 %v28_v4, %v30_v3  ;;  %vm86_vm11 = vmor %vm85_vm10, %vm82_vm9 }
  0x13   :  { %v44_v16 = vsub.s32 %v41_v12, %v30_v3  ;;  %p137_p8 = por %p136_p7, %p135_p6 }
  0x14   :  { %v32_v11 = vrot.slane %v25_v10, %v31_v5 }
  0x15   :  { %p138_p9 = pnand %p137_p8, %p131_p5 }
  0x16   :  { %vm33_vm1 = vcmp.ne.s32.totalorder %v32_v11, 0 }
  0x17   :  { %v34_v13 = vsel %vm33_vm1, 1, %v157_v9 }
  0x18   :  { %v35_v14 = vpack.c.b16 %v34_v13, %v34_v13 }
  0x1a   :  { %v36_v15 = vpack.c.b8 %v35_v14, %v35_v14 }
  0x1c   :  { %vm37_vm2 = vnez %v36_v15 }
  0x1d   :  { %v38_v17 = vsel %vm37_vm2, 16843009, %v157_v9 }
  0x1e   :  { %v45_v18 = vrot.slane %v38_v17, %v44_v16 }
  0x20   :  { %v46_v19 = vcombine.high %v45_v18, %v45_v18  ;;  %v53_v20 = vrot.slane %v45_v18, %v44_v16 }
  0x22   :  { %v60_v21 = vrot.slane %v46_v19, %v44_v16  ;;  %vm61_vm3 = vnez %v53_v20 }
  0x23   :  { %v63_v22 = vsel %vm61_vm3, 16843009, %v157_v9 }
  0x24   :  { %vm62_vm8 = vnez %v60_v21 }
  0x25   :  { %v64_v23 = vsel %vm62_vm8, 16843009, %v157_v9 }
  0x26   :  { %v65_v24 = vcombine.low %v63_v22, %v64_v23 }
  0x28   :  { %v72_v25 = vrot.slane %v65_v24, %v44_v16 }
  0x2a   :  { %v79_v27 = vrot.slane %v72_v25, %v44_v16 }
  0x2c   :  { %v88_v28 = vsel %vm86_vm11, %v79_v27, %v87_v26 }
  0x2d   :  { %89 = vst [vmem:[#allocation5] sm:$0x3] %v88_v28 }
  0x2e   :  { %141 = shalt.err (!%p138_p9)
}
  0x2f   :  { %99 = dma.vmem_to_hbm [thread:$0]  %s97_s11, 32, %s176_s1, [#allocation4]  }
  0x30   :  { %152 = dma.done.wait [#allocation4], 32  }
  0x31   :  { %153 = vsyncadd [#allocation4], 4294967264 }
  0x32   :  { %103 = vsyncpa [#allocation3], 1 }
  0x33   :  { %104 = vsyncpa [#allocation4], 1 }

</bundles_post_ra>
